<compile_context>
chip_gen: v7x
topology: tpu7x:2x2x1
jax: 0.10.0
libtpu: 0.0.40
codegen_flags: <defaults>
</compile_context>

<pallas_src>
import numpy as np
import jax
import jax.numpy as jnp
from jax.experimental import pallas as pl
from jax.experimental.pallas import tpu as pltpu


# Standard JPEG luminance quantization table (deterministic init, as in
# DiffJPEG: y_table = np.array([...], dtype=np.float32).T).
_Y_TABLE_NP = np.array(
    [[16, 11, 10, 16, 24, 40, 51, 61],
     [12, 12, 14, 19, 26, 58, 60, 55],
     [14, 13, 16, 24, 40, 57, 69, 56],
     [14, 17, 22, 29, 51, 87, 80, 62],
     [18, 22, 37, 56, 68, 109, 103, 77],
     [24, 35, 55, 64, 81, 104, 113, 92],
     [49, 64, 78, 87, 103, 121, 120, 101],
     [72, 92, 95, 98, 112, 100, 103, 99]],
    dtype=np.float32,
).T
Y_TABLE = jnp.asarray(_Y_TABLE_NP)

# Below this many elements the XLA-fused path beats kernel-launch overhead.
_SMALL_INPUT_THRESHOLD = 1 << 16
# Above this size, odd block counts pad to 1024 lanes (pad <= 960 elements).
_PAD_LANE_THRESHOLD = 1 << 16


def quality_to_factor(quality):
    """Same semantics as the PyTorch helper (not used in forward)."""
    if quality < 50:
        quality = 5000.0 / quality
    else:
        quality = 200.0 - quality * 2
    return quality / 100.0


def _round_up(v, m):
    return -(-v // m) * m


def _device_kind():
    try:
        return jax.devices()[0].device_kind.lower()
    except Exception:  # pragma: no cover - CPU/interpret fallbacks
        return ""


def _target_block_bytes():
    """Generation-aware f32 output-block budget."""
    kind = _device_kind()
    if "v7" in kind:
        return 7 << 20   # 3.2 TB/s HBM: amortize ~0.35us/step pipeline overhead
    if "v6" in kind:
        return 6 << 20   # 32 MiB scoped default: 4 x 6 MiB double-buffers fit
    if "v5" in kind:
        return 3 << 20   # v5e: 16 MiB scoped default; stay conservative
    return 4 << 20       # unknown generation: middle of the road


def _pick_layout(total):
    """Return (lane_width, padded_total) for a lane-dense (>=128) 2D slab."""
    for lw in (1024, 512, 256, 128):
        if total % lw == 0:
            return lw, total
    # Odd number of 8x8 blocks: pad the flat slab so stores stay unmasked
    # full-lane vst instead of the 64-lane vst.msk cliff.
    lw = 1024 if total >= _PAD_LANE_THRESHOLD else 128
    return lw, _round_up(total, lw)


def _make_quant_kernel(multiply):
    def kernel(x_ref, table_ref, o_ref):
        # Elementwise hot path on lane-dense (tr, L) tiles; the (1, L) tiled
        # quantization table broadcasts over the row (sublane) axis.
        x = x_ref[...].astype(jnp.float32)
        t = table_ref[...]
        q = x * t if multiply else x / t
        o_ref[...] = jnp.round(q)
    return kernel


def quantization_forward(x, y_table=Y_TABLE, *, block_rows=None, use_pallas=None,
                         multiply_by_reciprocal=False):
    """ans = round(x.float() / y_table) where y_table is (8, 8).

    multiply_by_reciprocal=True precomputes 1/y_table and multiplies in the
    kernel (cheaper VALU/EUP chain on v7x) at the cost of <=1 ULP / round-tie
    differences vs. torch.round(x / y_table). Default keeps exact parity.
    """
    orig_shape = x.shape
    assert orig_shape[-2:] == (8, 8), "expects trailing 8x8 DCT blocks"
    total = int(np.prod(orig_shape))

    # TPU-unfriendly wide dtypes: torch's .float() casts anyway.
    if np.dtype(x.dtype).itemsize > 4:
        x = x.astype(jnp.float32)

    if use_pallas is None:
        use_pallas = total >= _SMALL_INPUT_THRESHOLD
    if total == 0:
        use_pallas = False
    if not use_pallas:
        # Tiny inputs: launch/pipeline overhead dominates; let XLA fuse it.
        return jnp.round(x.astype(jnp.float32) / y_table.astype(jnp.float32))

    # Lane-dense 2D view: row-major reshape, so element column c of each row
    # lines up with table element c % 64 (lane_width is a multiple of 64).
    lane_width, padded_total = _pick_layout(total)
    x_flat = x.reshape(-1)
    if padded_total != total:
        x_flat = jnp.pad(x_flat, (0, padded_total - total))
    num_rows = padded_total // lane_width
    x2 = x_flat.reshape(num_rows, lane_width)

    table = y_table.astype(jnp.float32).reshape(-1)
    if multiply_by_reciprocal:
        table = 1.0 / table
    table_row = jnp.tile(table, lane_width // 64).reshape(1, lane_width)

    itemsize = max(int(np.dtype(x.dtype).itemsize), 1)
    row_align = max(8, 32 // min(itemsize, 4))        # 8 (f32), 16 (bf16), 32 (i8)
    if block_rows is None:
        bytes_per_row = lane_width * max(itemsize, 4)  # size by max(in, out) bytes
        block_rows = max(row_align,
                         (_target_block_bytes() // bytes_per_row)
                         // row_align * row_align)
    else:
        block_rows = max(row_align, _round_up(int(block_rows), row_align))

    if num_rows <= block_rows:
        if num_rows >= 2 * row_align:
            # Guarantee >=2 grid steps so the "parallel" axis can shard across
            # v7x's two TensorCores (harmless elsewhere: one extra ~0.35us step).
            tr = _round_up(-(-num_rows // 2), row_align)
        else:
            tr = num_rows          # single block spanning the full row dim
    else:
        tr = block_rows            # last block may be ragged; Pallas masks it
    grid = (pl.cdiv(num_rows, tr),)

    # Explicit scoped-VMEM budget: double-buffered in/out blocks + table + slack,
    # capped well under every generation's physical VMEM (v7x: 64 MiB per TC).
    in_block_bytes = tr * lane_width * itemsize
    out_block_bytes = tr * lane_width * 4
    vmem_limit = 2 * (in_block_bytes + out_block_bytes) + 4 * lane_width * 4 + (4 << 20)
    vmem_limit = int(min(40 << 20, max(16 << 20, vmem_limit)))

    out = pl.pallas_call(
        _make_quant_kernel(multiply_by_reciprocal),
        out_shape=jax.ShapeDtypeStruct((num_rows, lane_width), jnp.float32),
        grid_spec=pltpu.PrefetchScalarGridSpec(
            num_scalar_prefetch=0,
            grid=grid,
            in_specs=[
                pl.BlockSpec((tr, lane_width), lambda i: (i, 0)),   # x slab
                # Constant block index -> Pallas fetches the table once; no
                # per-step DMA for this stream.
                pl.BlockSpec((1, lane_width), lambda i: (0, 0)),
            ],
            out_specs=pl.BlockSpec((tr, lane_width), lambda i: (i, 0)),
        ),
        compiler_params=pltpu.CompilerParams(
            dimension_semantics=("parallel",),   # megacore-shardable on v7x
            vmem_limit_bytes=vmem_limit,
        ),
    )(x2, table_row)

    out_flat = out.reshape(-1)
    if padded_total != total:
        out_flat = out_flat[:total]
    return out_flat.reshape(orig_shape)


def quantization_forward_ref(x, y_table=Y_TABLE):
    """Pure-JAX reference mirroring the PyTorch forward."""
    return jnp.round(x.astype(jnp.float32) / y_table.astype(jnp.float32))


if __name__ == "__main__":
    root = jax.random.PRNGKey(0)
    k1, k2, k3, k4, k5 = jax.random.split(root, 5)

    # 1) Canonical small stack of 8x8 DCT blocks; force the Pallas path so the
    #    kernel is actually exercised at this size.
    x1 = jax.random.normal(k1, (2, 4, 8, 8), jnp.float32) * 100.0
    out1 = jax.block_until_ready(quantization_forward(x1, use_pallas=True))
    np.testing.assert_allclose(
        np.asarray(out1), np.asarray(quantization_forward_ref(x1)), atol=0, rtol=0)

    # 2) Odd 8x8-block count (total % 128 != 0): exercises the lane-dense pad
    #    path that replaced the old 64-lane fallback.
    x2 = jax.random.normal(k2, (3, 5, 8, 8), jnp.float32) * 50.0
    out2 = jax.block_until_ready(quantization_forward(x2, use_pallas=True))
    np.testing.assert_allclose(
        np.asarray(out2), np.asarray(quantization_forward_ref(x2)), atol=0, rtol=0)

    # 3) Multi-step grid with a ragged (masked) last block: (20, 1024) rows
    #    with block_rows=8 -> grid of 3, last block masked.
    x3 = jax.random.normal(k3, (20, 16, 8, 8), jnp.float32) * 75.0
    out3 = jax.block_until_ready(
        quantization_forward(x3, use_pallas=True, block_rows=8))
    np.testing.assert_allclose(
        np.asarray(out3), np.asarray(quantization_forward_ref(x3)), atol=0, rtol=0)

    # 4) bf16 input: 16-row sublane alignment + in-kernel cast to f32.
    x4 = (jax.random.normal(k4, (16, 16, 8, 8), jnp.float32) * 60.0).astype(jnp.bfloat16)
    out4 = jax.block_until_ready(quantization_forward(x4, use_pallas=True))
    np.testing.assert_allclose(
        np.asarray(out4), np.asarray(quantization_forward_ref(x4)), atol=0, rtol=0)

    # 5) Auto path (above small-input threshold): fits one block but is split
    #    into a 2-step grid so the parallel axis can use both v7x cores.
    x5 = jax.random.normal(k5, (64, 16, 8, 8), jnp.float32) * 80.0
    out5 = jax.block_until_ready(quantization_forward(x5))
    np.testing.assert_allclose(
        np.asarray(out5), np.asarray(quantization_forward_ref(x5)), atol=0, rtol=0)

    # 6) Auto path on a tiny input falls back to pure XLA (same numerics).
    out6 = jax.block_until_ready(quantization_forward(x1))
    np.testing.assert_allclose(
        np.asarray(out6), np.asarray(quantization_forward_ref(x1)), atol=0, rtol=0)

    print("KERNEL_OK")
</pallas_src>

<mosaic_0001>
module attributes {stable_mosaic.version = 11 : i64} {
  func.func @kernel(%arg0: i32, %arg1: memref<1x512xf32, #tpu.memory_space<vmem>>, %arg2: memref<1x512xf32, #tpu.memory_space<vmem>>, %arg3: memref<1x512xf32, #tpu.memory_space<vmem>>) attributes {dimension_semantics = [#tpu.dimension_semantics<parallel>], iteration_bounds = array<i64: 1>, scalar_prefetch = 0 : i64, scratch_operands = 0 : i64, tpu.core_type = #tpu.core_type<tc>, window_params = [{transform_indices = @transform_0, window_bounds = array<i64: 1, 512>}, {pipeline_mode = #tpu.pipeline_mode<synchronous>, transform_indices = @transform_1, window_bounds = array<i64: 1, 512>}, {transform_indices = @transform_2, window_bounds = array<i64: 1, 512>}]} {
    %c0 = arith.constant 0 : index
    %c0_0 = arith.constant 0 : index
    %0 = vector.load %arg1[%c0, %c0_0] : memref<1x512xf32, #tpu.memory_space<vmem>>, vector<1x512xf32>
    %c0_1 = arith.constant 0 : index
    %c0_2 = arith.constant 0 : index
    %1 = vector.load %arg2[%c0_1, %c0_2] : memref<1x512xf32, #tpu.memory_space<vmem>>, vector<1x512xf32>
    %2 = arith.divf %0, %1 : vector<1x512xf32>
    %3 = math.roundeven %2 : vector<1x512xf32>
    %c0_3 = arith.constant 0 : index
    %c0_4 = arith.constant 0 : index
    %4 = vector.load %arg3[%c0_3, %c0_4] : memref<1x512xf32, #tpu.memory_space<vmem>>, vector<1x512xf32>
    tpu.vector_store %arg3[%c0_3, %c0_4], %3 {strides = array<i32>} : memref<1x512xf32, #tpu.memory_space<vmem>>, vector<1x512xf32>,
    return
  }
  func.func @transform_0(%arg0: i32) -> (i32, i32) {
    %c0_i32 = arith.constant 0 : i32
    %c0_i32_0 = arith.constant 0 : i32
    return %arg0, %c0_i32 : i32, i32
  }
  func.func @transform_1(%arg0: i32) -> (i32, i32) {
    %c0_i32 = arith.constant 0 : i32
    %c0_i32_0 = arith.constant 0 : i32
    %c0_i32_1 = arith.constant 0 : i32
    return %c0_i32, %c0_i32_0 : i32, i32
  }
  func.func @transform_2(%arg0: i32) -> (i32, i32) {
    %c0_i32 = arith.constant 0 : i32
    %c0_i32_0 = arith.constant 0 : i32
    return %arg0, %c0_i32 : i32, i32
  }
}

</mosaic_0001>

<bundles_post_ra>
// kernel: tpu_custom_call.1
= control target key start
LH: loop header
LB: loop body
LE: loop exit
PB: predicated region body
PF: predicated region fallthrough
CT: control target
= control target key end

     0   :  { %7 = vsyncpa [#allocation3], 0  ;;  %s194_s0 = inlined_call_operand.hbm [shape: f32[1,512], index: 0, kind: input, shape index: {}]   ;;  %s195_s1 = inlined_call_operand.hbm [shape: f32[1,512], index: 1, kind: input, shape index: {}]   ;;  %s196_s2 = inlined_call_operand.hbm [shape: f32[1,512], index: 2, kind: output, shape index: {}]  }
   0x1   :  { %8 = vsyncpa [#allocation6], 0 }
   0x2   :  { %9 = vsyncpa [#allocation4], 0  ;;  %s140_s9 = smov [#allocation2]   ;;  %s141_s11 = smov [#allocation5]  }
   0x3   :  { %s16_s10 = sshll.u32 %s140_s9, 4  ;;  %s26_s12 = sshll.u32 %s141_s11, 4  ;;  %s17_s10 = int_to_ptr.vmem [resolvable:$true] %s16_s10  ;;  %s27_s12 = int_to_ptr.vmem [resolvable:$true] %s26_s12 }
   0x4   :  { %s68_s15 = scalar_lea.hbm %s194_s0, 64 }
   0x5   :  { %p69_p0 = scmp.ne.s32.totalorder %s194_s0, %s68_s15  ;;  %p72_p1 = scmp.lt.u32.totalorder %s68_s15, %s194_s0 }
   0x7   :  { %p74_p2 = pnand %p72_p1, %p69_p0 }
   0x9   :  { %77 = shalt.err (!%p74_p2)
}
   0xa   :  { %s78_s20 = scalar_lea.vmem %s17_s10, 64  ;;  %p83_p4 = scmp.lt.s32.totalorder %s17_s10, %s17_s10 }
   0xb   :  { %p79_p3 = scmp.ne.s32.totalorder %s17_s10, %s78_s20  ;;  %p84_p5 = scmp.lt.s32.totalorder %s78_s20, %s78_s20 }
   0xd   :  { %p85_p6 = por %p84_p5, %p83_p4 }
   0xf   :  { %p86_p7 = pnand %p85_p6, %p79_p3 }
  0x11   :  { %89 = shalt.err (!%p86_p7)
}
  0x12   :  { %19 = dma.hbm_to_vmem [thread:$0]  %s194_s0, 64, %s17_s10, [#allocation3]  }
  0x13   :  { %s90_s25 = scalar_lea.hbm %s195_s1, 64 }
  0x14   :  { %p91_p8 = scmp.ne.s32.totalorder %s195_s1, %s90_s25  ;;  %p94_p9 = scmp.lt.u32.totalorder %s90_s25, %s195_s1 }
  0x16   :  { %p96_p10 = pnand %p94_p9, %p91_p8 }
  0x18   :  { %99 = shalt.err (!%p96_p10)
}
  0x19   :  { %s100_s30 = scalar_lea.vmem %s27_s12, 64  ;;  %p105_p12 = scmp.lt.s32.totalorder %s27_s12, %s27_s12 }
  0x1a   :  { %p101_p11 = scmp.ne.s32.totalorder %s27_s12, %s100_s30  ;;  %p106_p13 = scmp.lt.s32.totalorder %s100_s30, %s100_s30 }
  0x1c   :  { %p107_p0 = por %p106_p13, %p105_p12 }
  0x1e   :  { %p108_p1 = pnand %p107_p0, %p101_p11 }
  0x20   :  { %111 = shalt.err (!%p108_p1)
}
  0x21   :  { %29 = dma.hbm_to_vmem [thread:$0]  %s195_s1, 64, %s27_s12, [#allocation6]  }
  0x22   :  { %134 = dma.done.wait [#allocation3], 64  }
  0x23   :  { %135 = vsyncadd [#allocation3], 4294967232 }
  0x24   :  { %136 = dma.done.wait [#allocation6], 64  }
  0x25   :  { %137 = vsyncadd [#allocation6], 4294967232  ;;  %v37_v0 = vld [vmem:[#allocation5] sm:$0xf]  ;;  %v36_v1 = vld [vmem:[#allocation2] sm:$0xf]  ;;  %v41_v2 = vlaneseq }
  0x26   :  { %66 = vrcp.f32 %v37_v0  ;;  %s142_s4 = smov [#allocation7]  }
  0x27   :  { %s52_s5 = sshll.u32 %s142_s4, 4  ;;  %vm43_vm0 = vcmp.lt.s32.totalorder %v41_v2, 512  ;;  %s53_s5 = int_to_ptr.vmem [resolvable:$true] %s52_s5 }
  0x28   :  { %s112_s6 = scalar_lea.vmem %s53_s5, 64  ;;  %p117_p3 = scmp.lt.s32.totalorder %s53_s5, %s53_s5 }
  0x29   :  { %p113_p2 = scmp.ne.s32.totalorder %s53_s5, %s112_s6  ;;  %p118_p4 = scmp.lt.s32.totalorder %s112_s6, %s112_s6 }
  0x2b   :  { %p119_p5 = por %p118_p4, %p117_p3 }
  0x2d   :  { %p120_p6 = pnand %p119_p5, %p113_p2 }
  0x30   :  { %v67_v3 = vpop.eup %66 }
  0x31   :  { %v39_v4 = vmul.f32 %v67_v3, %v36_v1 }
  0x33   :  { %v62_v5 = vround.rtne.f32 %v39_v4 }
  0x35   :  { %45 = vst.msk [vmem:[#allocation7] sm:$0xf] %vm43_vm0, %v62_v5 }
  0x36   :  { %123 = shalt.err (!%p120_p6)
}
  0x37   :  { %s124_s8 = scalar_lea.hbm %s196_s2, 64 }
  0x38   :  { %p125_p7 = scmp.ne.s32.totalorder %s196_s2, %s124_s8  ;;  %p128_p8 = scmp.lt.u32.totalorder %s124_s8, %s196_s2 }
  0x3a   :  { %p130_p9 = pnand %p128_p8, %p125_p7 }
  0x3c   :  { %133 = shalt.err (!%p130_p9)
}
  0x3d   :  { %55 = dma.vmem_to_hbm [thread:$0]  %s53_s5, 64, %s196_s2, [#allocation4]  }
  0x3e   :  { %138 = dma.done.wait [#allocation4], 64  }
  0x3f   :  { %139 = vsyncadd [#allocation4], 4294967232 }
  0x40   :  { %59 = vsyncpa [#allocation3], 1 }
  0x41   :  { %60 = vsyncpa [#allocation6], 1 }
  0x42   :  { %61 = vsyncpa [#allocation4], 1 }

</bundles_post_ra>
